<compile_context>
chip_gen: v5e
topology: v5e:2x2
jax: 0.10.0
libtpu: 0.0.40
codegen_flags: <defaults>
</compile_context>

<pallas_src>
import jax
import jax.numpy as jnp
from jax.experimental import pallas as pl
from jax.experimental.pallas import tpu as pltpu


# ----------------------------- hardware budgets ------------------------------

def _vmem_budgets():
    """Returns (tile_budget_bytes, vmem_limit_bytes), generation aware."""
    cap = 64 * 1024 * 1024  # conservative default: v7x physical VMEM per TC
    try:
        cap = int(pltpu.get_tpu_info().vmem_capacity_bytes)
    except Exception:
        pass
    if cap >= 128 * 1024 * 1024:               # v5e / v6e: 128 MiB VMEM
        return 96 * 1024 * 1024, 110 * 1024 * 1024
    return 40 * 1024 * 1024, 48 * 1024 * 1024  # v7x: 64 MiB VMEM


_TARGET_BLOCK_BYTES = 4 * 1024 * 1024   # per-stream, per-buffer block target
_MIN_GRID_STEPS = 8                     # keep 'parallel' axis splittable on v7x


# ------------------------------ tiling helpers -------------------------------

def _round_up(x, m):
    return (x + m - 1) // m * m


def _sublane(dtype):
    # sublane packing granularity: f32 -> 8, bf16 -> 16, int8/fp8 -> 32
    return {4: 8, 2: 16, 1: 32}.get(jnp.dtype(dtype).itemsize, 8)


def _choose_layout(shape):
    """Pick a lane-dense 2-D (rows, lanes) view for this purely elementwise op."""
    total = 1
    for d in shape:
        total *= d
    for lanes in (1024, 512, 256, 128):
        if total % lanes == 0:
            return total // lanes, lanes
    # Fallback: keep the natural last dim (full-array-dim exception; masked
    # stores if hidden % 128 != 0 — legal, just slower).
    # TODO(synk): a 2-D grid over the lane dim would also cover huge, unaligned
    # hidden sizes without relying on the full-dim exception.
    hidden = shape[-1] if len(shape) else 1
    return total // hidden, hidden


def _pick_tile_rows(n_inputs, rows, lanes, dtype, tile_budget):
    sub = _sublane(dtype)
    bytes_per_row = max(lanes * jnp.dtype(dtype).itemsize, 1)
    streams = n_inputs + 1                               # n inputs + 1 output
    budget_rows = tile_budget // (2 * streams * bytes_per_row)   # 2 = dbl buffer
    target_rows = _TARGET_BLOCK_BYTES // bytes_per_row
    tile = min(budget_rows, target_rows)
    # Keep at least _MIN_GRID_STEPS grid steps so the 'parallel' axis can be
    # split across v7x's two TensorCores (no-op cost on v5e/v6e).
    tile = min(tile, max(pl.cdiv(rows, _MIN_GRID_STEPS), 1))
    tile = max((tile // sub) * sub, sub)
    if tile >= rows:
        # single block covering the whole row dim (full-dim exception)
        return rows
    return tile


# ---------------------------------- kernel -----------------------------------

def _make_weighted_sum_kernel(n_inputs):
    def kernel(w_ref, *refs):
        # w_ref : SMEM (n_inputs,) f32 scalar weights (scalar-prefetch arg)
        # refs  : n_inputs VMEM input tiles (tile_rows, lanes) + 1 output tile
        x_refs = refs[:n_inputs]
        o_ref = refs[n_inputs]
        ws = [w_ref[i] for i in range(n_inputs)]          # hoist scalar reads
        acc = x_refs[0][...].astype(jnp.float32) * ws[0]  # seed, no zero-fill
        for i in range(1, n_inputs):
            acc = acc + x_refs[i][...].astype(jnp.float32) * ws[i]
        o_ref[...] = acc.astype(o_ref.dtype)

    return kernel


def _weighted_sum_2d(weights, inputs_2d, tile_rows, vmem_limit):
    """inputs_2d: list of (rows, lanes) arrays (no padding required)."""
    n_inputs = len(inputs_2d)
    rows, lanes = inputs_2d[0].shape
    dtype = inputs_2d[0].dtype
    itemsize = jnp.dtype(dtype).itemsize
    total = rows * lanes

    grid = (pl.cdiv(rows, tile_rows),)
    block = pl.BlockSpec((tile_rows, lanes), lambda r, w: (r, 0))

    return pl.pallas_call(
        _make_weighted_sum_kernel(n_inputs),
        out_shape=jax.ShapeDtypeStruct((rows, lanes), dtype),
        grid_spec=pltpu.PrefetchScalarGridSpec(
            num_scalar_prefetch=1,           # weights -> SMEM, once, up front
            grid=grid,
            in_specs=[block for _ in range(n_inputs)],
            out_specs=pl.BlockSpec((tile_rows, lanes), lambda r, w: (r, 0)),
        ),
        compiler_params=pltpu.CompilerParams(
            dimension_semantics=("parallel",),
            vmem_limit_bytes=vmem_limit,
        ),
        cost_estimate=pl.CostEstimate(
            flops=2 * n_inputs * total,
            transcendentals=0,
            bytes_accessed=(n_inputs + 1) * total * itemsize,
        ),
    )(weights, *inputs_2d)


@jax.jit
def linear_weighted_sum(weights, *inputs):
    """weights: (n_inputs,) f32; inputs: n_inputs arrays of identical shape."""
    n_inputs = len(inputs)
    orig_shape = inputs[0].shape
    dtype = inputs[0].dtype

    rows, lanes = _choose_layout(orig_shape)
    flat = [x.reshape(rows, lanes) for x in inputs]       # pure reshape, no pad

    tile_budget, vmem_limit = _vmem_budgets()
    tile_rows = _pick_tile_rows(n_inputs, rows, lanes, dtype, tile_budget)

    out = _weighted_sum_2d(weights.astype(jnp.float32), flat, tile_rows,
                           vmem_limit)
    return out.reshape(orig_shape)


# ------------------------------- module mirror --------------------------------

class LinearWeightedSumPallas:
    """Mirror of the PyTorch module: n_inputs scalar weights init'd to 1/11."""

    def __init__(self, n_inputs):
        self.n_inputs = n_inputs
        self.weights = jnp.full((n_inputs,), 1.0 / 11.0, dtype=jnp.float32)

    def __call__(self, inputs):
        return linear_weighted_sum(self.weights, *inputs)


# --------------------------------- reference -----------------------------------

def _reference(inputs, weights):
    acc = jnp.zeros(inputs[0].shape, jnp.float32)
    for i, emb in enumerate(inputs):
        acc = acc + emb.astype(jnp.float32) * weights[i]
    return acc.astype(inputs[0].dtype)


if __name__ == "__main__":
    # --- test 1: f32, element count divisible by 1024 (lane-dense flatten) ---
    n_inputs = 3
    B, S, H = 2, 8, 128
    keys = jax.random.split(jax.random.PRNGKey(0), n_inputs)
    inputs = [jax.random.normal(k, (B, S, H), dtype=jnp.float32) for k in keys]
    module = LinearWeightedSumPallas(n_inputs)
    out = jax.block_until_ready(module(inputs))
    ref = _reference(inputs, module.weights)
    assert out.shape == (B, S, H)
    assert jnp.allclose(out, ref, atol=1e-5, rtol=1e-5)

    # --- test 2: bf16, ragged row count (flatten to lanes=256 + masked tail) --
    n_inputs2 = 4
    B2, S2, H2 = 3, 7, 256
    keys2 = jax.random.split(jax.random.PRNGKey(1), n_inputs2)
    inputs2 = [jax.random.normal(k, (B2, S2, H2), dtype=jnp.bfloat16)
               for k in keys2]
    module2 = LinearWeightedSumPallas(n_inputs2)
    out2 = jax.block_until_ready(module2(inputs2))
    ref2 = _reference(inputs2, module2.weights)
    assert out2.shape == (B2, S2, H2)
    assert jnp.allclose(out2.astype(jnp.float32), ref2.astype(jnp.float32),
                        atol=2e-2, rtol=2e-2)

    # --- test 3: f32, element count not divisible by 128 (fallback layout) ----
    n_inputs3 = 5
    B3, S3, H3 = 2, 5, 96
    keys3 = jax.random.split(jax.random.PRNGKey(2), n_inputs3)
    inputs3 = [jax.random.normal(k, (B3, S3, H3), dtype=jnp.float32)
               for k in keys3]
    module3 = LinearWeightedSumPallas(n_inputs3)
    out3 = jax.block_until_ready(module3(inputs3))
    ref3 = _reference(inputs3, module3.weights)
    assert out3.shape == (B3, S3, H3)
    assert jnp.allclose(out3, ref3, atol=1e-5, rtol=1e-5)

    print("KERNEL_OK")
</pallas_src>

<mosaic_0001>
module attributes {stable_mosaic.version = 11 : i64} {
  func.func @kernel(%arg0: i32, %arg1: memref<3xf32, #tpu.memory_space<smem>>, %arg2: memref<2x1024xf32, #tpu.memory_space<vmem>>, %arg3: memref<2x1024xf32, #tpu.memory_space<vmem>>, %arg4: memref<2x1024xf32, #tpu.memory_space<vmem>>, %arg5: memref<2x1024xf32, #tpu.memory_space<vmem>>) attributes {dimension_semantics = [#tpu.dimension_semantics<parallel>], iteration_bounds = array<i64: 1>, scalar_prefetch = 1 : i64, scratch_operands = 0 : i64, tpu.core_type = #tpu.core_type<tc>, window_params = [{transform_indices = @transform_0, window_bounds = array<i64: 2, 1024>}, {transform_indices = @transform_1, window_bounds = array<i64: 2, 1024>}, {transform_indices = @transform_2, window_bounds = array<i64: 2, 1024>}, {transform_indices = @transform_3, window_bounds = array<i64: 2, 1024>}]} {
    %c0 = arith.constant 0 : index
    %0 = memref.load %arg1[%c0] : memref<3xf32, #tpu.memory_space<smem>>
    %c1 = arith.constant 1 : index
    %1 = memref.load %arg1[%c1] : memref<3xf32, #tpu.memory_space<smem>>
    %c2 = arith.constant 2 : index
    %2 = memref.load %arg1[%c2] : memref<3xf32, #tpu.memory_space<smem>>
    %c0_0 = arith.constant 0 : index
    %c0_1 = arith.constant 0 : index
    %3 = vector.load %arg2[%c0_0, %c0_1] : memref<2x1024xf32, #tpu.memory_space<vmem>>, vector<2x1024xf32>
    %4 = vector.broadcast %0 : f32 to vector<2x1024xf32>
    %5 = arith.mulf %3, %4 : vector<2x1024xf32>
    %c0_2 = arith.constant 0 : index
    %c0_3 = arith.constant 0 : index
    %6 = vector.load %arg3[%c0_2, %c0_3] : memref<2x1024xf32, #tpu.memory_space<vmem>>, vector<2x1024xf32>
    %7 = vector.broadcast %1 : f32 to vector<2x1024xf32>
    %8 = arith.mulf %6, %7 : vector<2x1024xf32>
    %9 = arith.addf %5, %8 : vector<2x1024xf32>
    %c0_4 = arith.constant 0 : index
    %c0_5 = arith.constant 0 : index
    %10 = vector.load %arg4[%c0_4, %c0_5] : memref<2x1024xf32, #tpu.memory_space<vmem>>, vector<2x1024xf32>
    %11 = vector.broadcast %2 : f32 to vector<2x1024xf32>
    %12 = arith.mulf %10, %11 : vector<2x1024xf32>
    %13 = arith.addf %9, %12 : vector<2x1024xf32>
    %c0_6 = arith.constant 0 : index
    %c0_7 = arith.constant 0 : index
    %14 = vector.load %arg5[%c0_6, %c0_7] : memref<2x1024xf32, #tpu.memory_space<vmem>>, vector<2x1024xf32>
    tpu.vector_store %arg5[%c0_6, %c0_7], %13 {strides = array<i32>} : memref<2x1024xf32, #tpu.memory_space<vmem>>, vector<2x1024xf32>,
    return
  }
  func.func @transform_0(%arg0: i32, %arg1: memref<3xf32, #tpu.memory_space<smem>>) -> (i32, i32) {
    %c0_i32 = arith.constant 0 : i32
    %c0_i32_0 = arith.constant 0 : i32
    return %arg0, %c0_i32 : i32, i32
  }
  func.func @transform_1(%arg0: i32, %arg1: memref<3xf32, #tpu.memory_space<smem>>) -> (i32, i32) {
    %c0_i32 = arith.constant 0 : i32
    %c0_i32_0 = arith.constant 0 : i32
    return %arg0, %c0_i32 : i32, i32
  }
  func.func @transform_2(%arg0: i32, %arg1: memref<3xf32, #tpu.memory_space<smem>>) -> (i32, i32) {
    %c0_i32 = arith.constant 0 : i32
    %c0_i32_0 = arith.constant 0 : i32
    return %arg0, %c0_i32 : i32, i32
  }
  func.func @transform_3(%arg0: i32, %arg1: memref<3xf32, #tpu.memory_space<smem>>) -> (i32, i32) {
    %c0_i32 = arith.constant 0 : i32
    %c0_i32_0 = arith.constant 0 : i32
    return %arg0, %c0_i32 : i32, i32
  }
}

</mosaic_0001>

<bundles_post_ra>
// kernel: linear_weighted_sum.1
= control target key start
LH: loop header
LB: loop body
LE: loop exit
PB: predicated region body
PF: predicated region fallthrough
CT: control target
= control target key end

     0   :  { %s68_s18 = smov [#allocation3]   ;;  %s121_s0 = inlined_call_operand.vmem [shape: f32[3], index: 0, kind: input, shape index: {}]   ;;  %s122_s1 = inlined_call_operand.vmem [shape: f32[2,1024], index: 1, kind: input, shape index: {}]   ;;  %s123_s2 = inlined_call_operand.vmem [shape: f32[2,1024], index: 2, kind: input, shape index: {}]   ;;  %s124_s3 = inlined_call_operand.vmem [shape: f32[2,1024], index: 3, kind: input, shape index: {}]   ;;  %s125_s4 = inlined_call_operand.vmem [shape: f32[2,1024], index: 4, kind: output, shape index: {}]  }
   0x1   :  { %s10_s17 = sshll.u32 %s121_s0, 4  ;;  %s11_s17 = int_to_ptr.vmem [resolvable:$true] %s10_s17 }
   0x2   :  { %13 = dma.vmem_to_smem %s11_s17, 16, %s68_s18, [#allocation2] }
   0x3   :  { %66 = dma.done.wait [#allocation2], 16 }
   0x4   :  { %67 = vsyncadd [#allocation2], 4294967280 }
   0x5   :  { %16 = sfence }
   0x6   :  { %s23_s19 = sld [smem:[#allocation3]]  ;;  %v26_v0 = vld [vmem:[%s122_s1] sm:$0xff]  ;;  %v27_v1 = vld [vmem:[%s122_s1 + $0x8] sm:$0xff] }
   0x7   :  { %s51_s20 = sld [smem:[#allocation3 + $0x1]]  ;;  %v31_v2 = vld [vmem:[%s123_s2] sm:$0xff]  ;;  %v32_v3 = vld [vmem:[%s123_s2 + $0x8] sm:$0xff] }
   0x8   :  { %s52_s21 = sld [smem:[#allocation3 + $0x2]]  ;;  %v38_v5 = vld [vmem:[%s124_s3] sm:$0xff]  ;;  %v39_v6 = vld [vmem:[%s124_s3 + $0x8] sm:$0xff] }
   0xc   :  { %v28_v4 = vstv %s23_s19 }
   0xd   :  { %v29_v7 = vmul.f32 %v28_v4, %v26_v0  ;;  %v33_v8 = vstv %s51_s20  ;;  %v30_v9 = vmul.f32 %v28_v4, %v27_v1 }
   0xe   :  { %v34_v10 = vmul.f32 %v33_v8, %v31_v2  ;;  %v40_v11 = vstv %s52_s21  ;;  %v35_v12 = vmul.f32 %v33_v8, %v32_v3 }
   0xf   :  { %v41_v13 = vmul.f32 %v40_v11, %v38_v5  ;;  %v42_v14 = vmul.f32 %v40_v11, %v39_v6 }
  0x10   :  { %v36_v15 = vadd.f32 %v34_v10, %v29_v7  ;;  %v37_v16 = vadd.f32 %v35_v12, %v30_v9 }
  0x12   :  { %v43_v17 = vadd.f32 %v41_v13, %v36_v15  ;;  %v44_v18 = vadd.f32 %v42_v14, %v37_v16 }
  0x14   :  { %45 = vst [vmem:[%s125_s4] sm:$0xff] %v43_v17 }
  0x15   :  { %46 = vst [vmem:[%s125_s4 + $0x8] sm:$0xff] %v44_v18 }

</bundles_post_ra>
